<compile_context>
chip_gen: v5e
topology: v5e:2x2
jax: 0.10.0
libtpu: 0.0.40
codegen_flags: <defaults>
</compile_context>

<pallas_src>
import functools

import numpy as np
import jax
import jax.numpy as jnp
from jax.experimental import pallas as pl
from jax.experimental.pallas import tpu as pltpu


def _cdiv(a, b):
  return -(-a // b)


def obs_encoder_kernel(
    x_ref, slab_ref,
    w1_ref, b1_ref, wef_ref, bef_ref, wiha_ref,
    whh_ref, bhh_ref, wqah_ref, wqat_ref, bqa_ref,
    out_ref,
    *, n_batch, n_entities, n_heads, head_dim, hidden_dim, atten_dim,
    task_dim, n_actions, out_width, compute_dtype):
  B, E = n_batch, n_entities
  H, Ad, e, nh, T = hidden_dim, atten_dim, head_dim, n_heads, task_dim
  R = B * E
  cdt = compute_dtype
  f32 = jnp.float32

  # Packed per-row slab: [h_prev (H) | task_z (T) | scenario (1) | mask (E)].
  slab = slab_ref[...]
  h_prev = slab[:, :H]                                             # (R, H) f32
  tz = slab[:, H:H + T]                                            # (R, T)
  agent_mask = slab[:, H + T:H + T + 1] != 0.0                     # (R, 1)
  maskcols = slab[:, H + T + 1:H + T + 1 + E]                      # (R, E) f32

  # fc1_state: Linear + ReLU over all (batch * entity) rows in one matmul.
  x = x_ref[...].astype(cdt)
  embed = jnp.dot(x, w1_ref[...], preferred_element_type=f32) + b1_ref[...]
  embed = jnp.maximum(embed, 0.0)                                  # (R, H) f32

  # Fused projection: embed @ [Wq | Wk | Wv | Wih_embed(r|z|n)], biases fused.
  proj = jnp.dot(embed.astype(cdt), wef_ref[...],
                 preferred_element_type=f32) + bef_ref[...]        # (R, 3Ad+3H)
  q2 = proj[:, :Ad]
  k2 = proj[:, Ad:2 * Ad]
  v2 = jnp.maximum(proj[:, 2 * Ad:3 * Ad], 0.0)                    # value ReLU
  c0 = 3 * Ad                                                      # GRU gate cols

  # ---- Batched multi-head attention (heads stacked into the batch dim). ----
  # g index = (head, batch); ONE score matmul, ONE masked softmax, ONE PV.
  def per_head_batch(t2):                                # (R, Ad) -> (nh*B, E, e)
    return jnp.stack([t2[:, hh * e:(hh + 1) * e] for hh in range(nh)],
                     axis=0).reshape(nh * B, E, e)

  qh = per_head_batch(q2).astype(cdt)
  kh = per_head_batch(k2).astype(cdt)
  vh = per_head_batch(v2).astype(cdt)

  mask3 = maskcols.reshape(B, E, E)
  mask_g = jnp.concatenate([mask3] * nh, axis=0) != 0.0            # (nh*B, E, E)

  inv_scale = jnp.float32(1.0 / float(np.sqrt(e)))
  s = jnp.einsum('gqd,gkd->gqk', qh, kh,
                 preferred_element_type=f32) * inv_scale           # (nh*B, E, E)
  s = jnp.where(mask_g, jnp.float32(-1e30), s)
  m = jnp.max(s, axis=-1, keepdims=True)
  # NOTE: the masked zeroing of p is load-bearing for fully masked rows.
  p = jnp.where(mask_g, 0.0, jnp.exp(s - m))
  denom = jnp.sum(p, axis=-1, keepdims=True)
  w = p * pl.reciprocal(jnp.where(denom > 0.0, denom, 1.0), approx=True)
  att = jnp.einsum('gqk,gkd->gqd', w.astype(cdt), vh,
                   preferred_element_type=f32)                     # (nh*B, E, e)

  # ---- GRUCell.  gi = embed @ Wih_embed (+ bih, already in `proj`)
  #                   + sum_h att_h @ Wih_atten[head h rows]
  # (per-head accumulating matmuls instead of a lane concat of head outputs).
  gia = jnp.zeros((R, 3 * H), f32)
  for hh in range(nh):
    att_h = att[hh * B:(hh + 1) * B].reshape(R, e).astype(cdt)
    gia = gia + jnp.dot(att_h, wiha_ref[hh * e:(hh + 1) * e, :],
                        preferred_element_type=f32)
  gh = jnp.dot(h_prev.astype(cdt), whh_ref[...],
               preferred_element_type=f32) + bhh_ref[...]          # (R, 3H)
  r = jax.nn.sigmoid(proj[:, c0:c0 + H] + gia[:, :H] + gh[:, :H])
  z = jax.nn.sigmoid(proj[:, c0 + H:c0 + 2 * H] + gia[:, H:2 * H]
                     + gh[:, H:2 * H])
  n_gate = jnp.tanh(proj[:, c0 + 2 * H:c0 + 3 * H] + gia[:, 2 * H:]
                    + r * gh[:, 2 * H:])
  h_new = (1.0 - z) * n_gate + z * h_prev                          # (R, H)
  h_new = jnp.where(agent_mask, 0.0, h_new)

  # ---- q_alone head: accumulating matmuls instead of concat([h, task_z]).
  qvals = (jnp.dot(h_new.astype(cdt), wqah_ref[...], preferred_element_type=f32)
           + jnp.dot(tz.astype(cdt), wqat_ref[...], preferred_element_type=f32)
           + bqa_ref[...])
  qvals = jnp.where(agent_mask, 0.0, qvals)

  # Lane-dense packed output: [q (n_actions) | h (H) | zero pad to out_width].
  pieces = [qvals, h_new]
  pad = out_width - (n_actions + H)
  if pad:
    pieces.append(jnp.zeros((R, pad), f32))
  out_ref[...] = jnp.concatenate(pieces, axis=-1)


def prepare_params(params, matmul_dtype=jnp.float32):
  """One-time weight prep: fuse / split / reorder weights for the kernel.

  Matmul weights are stored in `matmul_dtype` (jnp.bfloat16 hits the native
  bf16 MXU on v5e/v6e/v7x).  Biases stay float32; all non-matmul kernel math
  runs in float32.
  """
  H = params["w1"].shape[1]
  cd = matmul_dtype
  f32 = jnp.float32
  wef = jnp.concatenate([params["wq"], params["wk"], params["wv"],
                         params["wih"][:H, :]], axis=1)
  bef = jnp.concatenate([params["bq"], params["bk"], params["bv"],
                         params["bih"]], axis=1)
  return {
      "w1": params["w1"].astype(cd),
      "b1": params["b1"].astype(f32),
      "wef": wef.astype(cd),
      "bef": bef.astype(f32),
      "wiha": params["wih"][H:, :].astype(cd),
      "whh": params["whh"].astype(cd),
      "bhh": params["bhh"].astype(f32),
      "wqah": params["wqa"][:H, :].astype(cd),
      "wqat": params["wqa"][H:, :].astype(cd),
      "bqa": params["bqa"].astype(f32),
  }


def obs_encoder_forward(prep, inputs_interact, obs_mask, scenario_mask,
                        h_interactive, task_z, *, n_agents, n_heads,
                        batch_block=128):
  bs, E, Din = inputs_interact.shape
  A = n_agents
  H = prep["whh"].shape[0]
  Ad = prep["wiha"].shape[0]
  head_dim = Ad // n_heads
  T = prep["wqat"].shape[0]
  n_actions = prep["bqa"].shape[-1]
  compute_dtype = prep["wef"].dtype
  f32 = jnp.float32

  slab_w = H + T + 1 + E
  out_cols = n_actions + H
  out_width = _cdiv(out_cols, 128) * 128          # lane-dense packed output
  row_bytes = 4 * (Din + slab_w + out_width)

  # >=2 batch blocks when possible so both v7x TensorCores get work.
  n_blocks = max(2 if bs >= 2 else 1, _cdiv(bs, batch_block))
  B_blk = _cdiv(bs, n_blocks)
  # VMEM guardrail: double-buffered block bytes well under v7x's 64 MiB.
  while B_blk > 1 and 2 * B_blk * E * row_bytes > (24 << 20):
    B_blk = _cdiv(B_blk, 2)
  if (B_blk * E) % 8 != 0:          # keep the (8,128) sublane rule satisfiable
    B_blk = bs                      # fall back to one full-batch block
  n_blocks = _cdiv(bs, B_blk)
  bs_p = n_blocks * B_blk
  pad_b = bs_p - bs

  # Combined attention mask (agent self-diag | obs mask); non-agent query rows
  # (only computed for layout convenience) are fully masked.
  eye_e = jnp.eye(E, dtype=f32)
  comb = jnp.maximum(obs_mask.astype(f32), eye_e[None])
  comb = jnp.where(jnp.arange(E)[None, :, None] >= A, 1.0, comb)   # (bs, E, E)

  # Pad agent-sized tensors out to n_entities rows (padded rows fully masked).
  def pad_entities(a, fill):
    pad = jnp.full((bs, E - A) + a.shape[2:], fill, a.dtype)
    return jnp.concatenate([a, pad], axis=1)

  h_full = pad_entities(h_interactive.reshape(bs, A, H).astype(f32), 0.0)
  tz_full = pad_entities(task_z.astype(f32), 0.0)
  scen_full = pad_entities(
      scenario_mask[:, :A].astype(f32)[:, :, None], 1.0)           # (bs, E, 1)

  # Packed per-row input slab -> one DMA per block for the narrow inputs.
  slab = jnp.concatenate([h_full, tz_full, scen_full, comb], axis=-1)

  def pad_batch(a):
    if pad_b == 0:
      return a
    return jnp.concatenate(
        [a, jnp.zeros((pad_b,) + a.shape[1:], a.dtype)], axis=0)

  x2 = pad_batch(inputs_interact.astype(f32)).reshape(bs_p * E, Din)
  slab2 = pad_batch(slab).reshape(bs_p * E, slab_w)

  weights = (prep["w1"], prep["b1"], prep["wef"], prep["bef"], prep["wiha"],
             prep["whh"], prep["bhh"], prep["wqah"], prep["wqat"], prep["bqa"])

  kernel = functools.partial(
      obs_encoder_kernel, n_batch=B_blk, n_entities=E, n_heads=n_heads,
      head_dim=head_dim, hidden_dim=H, atten_dim=Ad, task_dim=T,
      n_actions=n_actions, out_width=out_width, compute_dtype=compute_dtype)

  R = B_blk * E  # rows per batch block

  def blocked(cols):
    return pl.BlockSpec((R, cols), lambda i: (i, 0))

  def full_spec(a):
    return pl.BlockSpec(a.shape, lambda i: (0,) * a.ndim)

  in_specs = ([blocked(Din), blocked(slab_w)]
              + [full_spec(w) for w in weights])
  out_specs = blocked(out_width)
  out_shape = jax.ShapeDtypeStruct((bs_p * E, out_width), f32)

  weight_bytes = sum(int(np.prod(w.shape)) * w.dtype.itemsize for w in weights)
  vmem_est = 2 * B_blk * E * row_bytes + 2 * weight_bytes + (4 << 20)
  vmem_limit = int(min(max(vmem_est, 32 << 20), 64 << 20))

  out2 = pl.pallas_call(
      kernel,
      out_shape=out_shape,
      grid_spec=pltpu.PrefetchScalarGridSpec(
          num_scalar_prefetch=0, grid=(n_blocks,),
          in_specs=in_specs, out_specs=out_specs),
      compiler_params=pltpu.CompilerParams(
          # batch blocks are independent -> megacore sharding on v7x
          dimension_semantics=("parallel",),
          vmem_limit_bytes=vmem_limit),
  )(x2, slab2, *weights)

  out3 = out2.reshape(bs_p, E, out_width)
  q = out3[:bs, :A, :n_actions]
  h = out3[:bs, :A, n_actions:n_actions + H]
  return q, h


def reference_forward(params, x, obs_mask, scenario_mask, h_prev, task_z,
                      *, n_agents, n_heads):
  """Pure-JAX mirror of the PyTorch forward, for verification."""
  bs, E, _ = x.shape
  H = params["w1"].shape[1]
  Ad = params["wq"].shape[1]
  e = Ad // n_heads

  embed = jax.nn.relu(x @ params["w1"] + params["b1"])             # (bs,E,H)
  embed_t = jnp.swapaxes(embed, 0, 1)                              # (E,bs,H)
  q = (embed_t @ params["wq"] + params["bq"]).reshape(E, bs * n_heads, e)
  q = jnp.swapaxes(q, 0, 1)                                        # (bs*h,E,e)
  k = (embed_t @ params["wk"] + params["bk"]).reshape(E, bs * n_heads, e)
  k = jnp.transpose(k, (1, 2, 0))                                  # (bs*h,e,E)
  v = jax.nn.relu(embed_t @ params["wv"] + params["bv"]).reshape(E, bs * n_heads, e)
  v = jnp.swapaxes(v, 0, 1)                                        # (bs*h,E,e)
  q = q[:, :n_agents, :]
  score = jnp.matmul(q, k) / np.float32(np.sqrt(e))

  padded_eye = jnp.zeros((n_agents, E)).at[:, :n_agents].set(jnp.eye(n_agents))
  score = jnp.where(padded_eye[None].astype(bool), -jnp.inf, score)
  obs_m = obs_mask[:, :n_agents, :].astype(bool)
  score = jnp.where(jnp.repeat(obs_m, n_heads, axis=0), -jnp.inf, score)
  w = jax.nn.softmax(score, axis=-1)
  w = jnp.where(jnp.isnan(w), 0.0, w)
  atten = jnp.matmul(w, v)                                         # (bs*h,A,e)
  atten = jnp.swapaxes(atten, 0, 1).reshape(n_agents, bs, n_heads * e)
  atten = jnp.swapaxes(atten, 0, 1).reshape(bs * n_agents, Ad)

  h_prev2 = h_prev.reshape(-1, H)
  emb_agents = embed[:, :n_agents, :].reshape(-1, H)
  xg = jnp.concatenate([emb_agents, atten], axis=-1)
  gi = xg @ params["wih"] + params["bih"]
  gh = h_prev2 @ params["whh"] + params["bhh"]
  r = jax.nn.sigmoid(gi[:, :H] + gh[:, :H])
  z = jax.nn.sigmoid(gi[:, H:2 * H] + gh[:, H:2 * H])
  n = jnp.tanh(gi[:, 2 * H:] + r * gh[:, 2 * H:])
  hnew = (1.0 - z) * n + z * h_prev2
  hnew = hnew.reshape(bs, n_agents, H)
  am = scenario_mask[:, :n_agents].astype(bool)[:, :, None]
  hnew = jnp.where(am, 0.0, hnew)
  qa = jnp.concatenate([hnew, task_z], axis=-1) @ params["wqa"] + params["bqa"]
  qa = jnp.where(am, 0.0, qa)
  return qa, hnew


def init_params(key, input_dim, hidden_dim, atten_dim, task_rep_dim, n_actions):
  ks = jax.random.split(key, 14)

  def lin(k, fan_in, shape):
    bound = 1.0 / np.sqrt(fan_in)
    return jax.random.uniform(k, shape, jnp.float32, -bound, bound)

  p = {}
  p["w1"] = lin(ks[0], input_dim, (input_dim, hidden_dim))
  p["b1"] = lin(ks[1], input_dim, (1, hidden_dim))
  p["wq"] = lin(ks[2], hidden_dim, (hidden_dim, atten_dim))
  p["bq"] = lin(ks[3], hidden_dim, (1, atten_dim))
  p["wk"] = lin(ks[4], hidden_dim, (hidden_dim, atten_dim))
  p["bk"] = lin(ks[5], hidden_dim, (1, atten_dim))
  p["wv"] = lin(ks[6], hidden_dim, (hidden_dim, atten_dim))
  p["bv"] = lin(ks[7], hidden_dim, (1, atten_dim))
  gru_in = hidden_dim + atten_dim
  p["wih"] = lin(ks[8], hidden_dim, (gru_in, 3 * hidden_dim))
  p["bih"] = lin(ks[9], hidden_dim, (1, 3 * hidden_dim))
  p["whh"] = lin(ks[10], hidden_dim, (hidden_dim, 3 * hidden_dim))
  p["bhh"] = lin(ks[11], hidden_dim, (1, 3 * hidden_dim))
  qa_in = hidden_dim + task_rep_dim
  p["wqa"] = lin(ks[12], qa_in, (qa_in, n_actions))
  p["bqa"] = lin(ks[13], qa_in, (1, n_actions))
  return p


if __name__ == "__main__":
  bs, n_entities, n_agents = 2, 8, 4
  input_dim, hidden_dim = 16, 32
  n_heads, atten_dim = 4, 32
  task_rep_dim, n_actions = 8, 6

  root = jax.random.PRNGKey(0)
  k_in = jax.random.split(root, 6)

  x = jax.random.normal(k_in[0], (bs, n_entities, input_dim), jnp.float32)
  obs_mask = (jax.random.uniform(k_in[1], (bs, n_entities, n_entities)) < 0.3
              ).astype(jnp.float32)
  scenario_mask = (jax.random.uniform(k_in[2], (bs, n_entities)) < 0.2
                   ).astype(jnp.float32)
  h_interactive = jax.random.normal(k_in[3], (bs, n_agents, hidden_dim),
                                    jnp.float32)
  task_z = jax.random.normal(k_in[4], (bs, n_agents, task_rep_dim), jnp.float32)

  params = init_params(k_in[5], input_dim, hidden_dim, atten_dim,
                       task_rep_dim, n_actions)

  q_r, h_r = reference_forward(params, x, obs_mask, scenario_mask,
                               h_interactive, task_z,
                               n_agents=n_agents, n_heads=n_heads)

  # f32 path: primary correctness gate (2e-3 vs pure-JAX reference).
  prep_f32 = prepare_params(params, jnp.float32)
  q_k, h_k = obs_encoder_forward(prep_f32, x, obs_mask, scenario_mask,
                                 h_interactive, task_z,
                                 n_agents=n_agents, n_heads=n_heads)
  jax.block_until_ready((q_k, h_k))
  assert q_k.shape == (bs, n_agents, n_actions)
  assert h_k.shape == (bs, n_agents, hidden_dim)
  assert np.allclose(np.asarray(q_k), np.asarray(q_r), atol=2e-3, rtol=2e-3)
  assert np.allclose(np.asarray(h_k), np.asarray(h_r), atol=2e-3, rtol=2e-3)

  # bf16 MXU-operand path (v5e/v6e/v7x): matmul inputs bf16, math/accum f32.
  prep_bf16 = prepare_params(params, jnp.bfloat16)
  q_b, h_b = obs_encoder_forward(prep_bf16, x, obs_mask, scenario_mask,
                                 h_interactive, task_z,
                                 n_agents=n_agents, n_heads=n_heads)
  jax.block_until_ready((q_b, h_b))
  assert np.allclose(np.asarray(q_b), np.asarray(q_r), atol=5e-2, rtol=5e-2)
  assert np.allclose(np.asarray(h_b), np.asarray(h_r), atol=5e-2, rtol=5e-2)

  print("KERNEL_OK")
</pallas_src>

<mosaic_0001>
module attributes {stable_mosaic.version = 11 : i64} {
  func.func @obs_encoder_kernel(%arg0: i32, %arg1: memref<8x16xf32, #tpu.memory_space<vmem>>, %arg2: memref<8x49xf32, #tpu.memory_space<vmem>>, %arg3: memref<16x32xf32, #tpu.memory_space<vmem>>, %arg4: memref<1x32xf32, #tpu.memory_space<vmem>>, %arg5: memref<32x192xf32, #tpu.memory_space<vmem>>, %arg6: memref<1x192xf32, #tpu.memory_space<vmem>>, %arg7: memref<32x96xf32, #tpu.memory_space<vmem>>, %arg8: memref<32x96xf32, #tpu.memory_space<vmem>>, %arg9: memref<1x96xf32, #tpu.memory_space<vmem>>, %arg10: memref<32x6xf32, #tpu.memory_space<vmem>>, %arg11: memref<8x6xf32, #tpu.memory_space<vmem>>, %arg12: memref<1x6xf32, #tpu.memory_space<vmem>>, %arg13: memref<8x128xf32, #tpu.memory_space<vmem>>) attributes {dimension_semantics = [#tpu.dimension_semantics<parallel>], iteration_bounds = array<i64: 2>, scalar_prefetch = 0 : i64, scratch_operands = 0 : i64, tpu.core_type = #tpu.core_type<tc>, window_params = [{transform_indices = @transform_0, window_bounds = array<i64: 8, 16>}, {transform_indices = @transform_1, window_bounds = array<i64: 8, 49>}, {pipeline_mode = #tpu.pipeline_mode<synchronous>, transform_indices = @transform_2, window_bounds = array<i64: 16, 32>}, {pipeline_mode = #tpu.pipeline_mode<synchronous>, transform_indices = @transform_3, window_bounds = array<i64: 1, 32>}, {pipeline_mode = #tpu.pipeline_mode<synchronous>, transform_indices = @transform_4, window_bounds = array<i64: 32, 192>}, {pipeline_mode = #tpu.pipeline_mode<synchronous>, transform_indices = @transform_5, window_bounds = array<i64: 1, 192>}, {pipeline_mode = #tpu.pipeline_mode<synchronous>, transform_indices = @transform_6, window_bounds = array<i64: 32, 96>}, {pipeline_mode = #tpu.pipeline_mode<synchronous>, transform_indices = @transform_7, window_bounds = array<i64: 32, 96>}, {pipeline_mode = #tpu.pipeline_mode<synchronous>, transform_indices = @transform_8, window_bounds = array<i64: 1, 96>}, {pipeline_mode = #tpu.pipeline_mode<synchronous>, transform_indices = @transform_9, window_bounds = array<i64: 32, 6>}, {pipeline_mode = #tpu.pipeline_mode<synchronous>, transform_indices = @transform_10, window_bounds = array<i64: 8, 6>}, {pipeline_mode = #tpu.pipeline_mode<synchronous>, transform_indices = @transform_11, window_bounds = array<i64: 1, 6>}, {transform_indices = @transform_12, window_bounds = array<i64: 8, 128>}]} {
    %c0 = arith.constant 0 : index
    %c0_0 = arith.constant 0 : index
    %0 = vector.load %arg2[%c0, %c0_0] : memref<8x49xf32, #tpu.memory_space<vmem>>, vector<8x49xf32>
    %1 = vector.extract_strided_slice %0 {offsets = [0, 0], sizes = [8, 32], strides = [1, 1]} : vector<8x49xf32> to vector<8x32xf32>
    %2 = vector.extract_strided_slice %0 {offsets = [0, 32], sizes = [8, 8], strides = [1, 1]} : vector<8x49xf32> to vector<8x8xf32>
    %3 = vector.extract_strided_slice %0 {offsets = [0, 40], sizes = [8, 1], strides = [1, 1]} : vector<8x49xf32> to vector<8x1xf32>
    %cst = arith.constant 0.000000e+00 : f32
    %4 = vector.broadcast %cst : f32 to vector<8x1xf32>
    %5 = arith.cmpf one, %3, %4 : vector<8x1xf32>
    %6 = vector.extract_strided_slice %0 {offsets = [0, 41], sizes = [8, 8], strides = [1, 1]} : vector<8x49xf32> to vector<8x8xf32>
    %c0_1 = arith.constant 0 : index
    %c0_2 = arith.constant 0 : index
    %7 = vector.load %arg1[%c0_1, %c0_2] : memref<8x16xf32, #tpu.memory_space<vmem>>, vector<8x16xf32>
    %c0_3 = arith.constant 0 : index
    %c0_4 = arith.constant 0 : index
    %8 = vector.load %arg3[%c0_3, %c0_4] : memref<16x32xf32, #tpu.memory_space<vmem>>, vector<16x32xf32>
    %cst_5 = arith.constant dense<0.000000e+00> : vector<8x32xf32>
    %9 = tpu.matmul %7, %8, %cst_5 {dimension_numbers = #tpu.dot_dimension_numbers<[1], [0], [0], [1], [0, 0, 1, 1], [], []>} : vector<8x16xf32>, vector<16x32xf32>, vector<8x32xf32> -> vector<8x32xf32>
    %c0_6 = arith.constant 0 : index
    %c0_7 = arith.constant 0 : index
    %10 = vector.load %arg4[%c0_6, %c0_7] : memref<1x32xf32, #tpu.memory_space<vmem>>, vector<1x32xf32>
    %11 = vector.broadcast %10 : vector<1x32xf32> to vector<8x32xf32>
    %12 = arith.addf %9, %11 : vector<8x32xf32>
    %cst_8 = arith.constant 0.000000e+00 : f32
    %13 = vector.broadcast %cst_8 : f32 to vector<8x32xf32>
    %14 = arith.maximumf %12, %13 : vector<8x32xf32>
    %c0_9 = arith.constant 0 : index
    %c0_10 = arith.constant 0 : index
    %15 = vector.load %arg5[%c0_9, %c0_10] : memref<32x192xf32, #tpu.memory_space<vmem>>, vector<32x192xf32>
    %cst_11 = arith.constant dense<0.000000e+00> : vector<8x192xf32>
    %16 = tpu.matmul %14, %15, %cst_11 {dimension_numbers = #tpu.dot_dimension_numbers<[1], [0], [0], [1], [0, 0, 1, 1], [], []>} : vector<8x32xf32>, vector<32x192xf32>, vector<8x192xf32> -> vector<8x192xf32>
    %c0_12 = arith.constant 0 : index
    %c0_13 = arith.constant 0 : index
    %17 = vector.load %arg6[%c0_12, %c0_13] : memref<1x192xf32, #tpu.memory_space<vmem>>, vector<1x192xf32>
    %18 = vector.broadcast %17 : vector<1x192xf32> to vector<8x192xf32>
    %19 = arith.addf %16, %18 : vector<8x192xf32>
    %20 = vector.extract_strided_slice %19 {offsets = [0, 0], sizes = [8, 32], strides = [1, 1]} : vector<8x192xf32> to vector<8x32xf32>
    %21 = vector.extract_strided_slice %19 {offsets = [0, 32], sizes = [8, 32], strides = [1, 1]} : vector<8x192xf32> to vector<8x32xf32>
    %22 = vector.extract_strided_slice %19 {offsets = [0, 64], sizes = [8, 32], strides = [1, 1]} : vector<8x192xf32> to vector<8x32xf32>
    %cst_14 = arith.constant 0.000000e+00 : f32
    %23 = vector.broadcast %cst_14 : f32 to vector<8x32xf32>
    %24 = arith.maximumf %22, %23 : vector<8x32xf32>
    %25 = vector.extract_strided_slice %20 {offsets = [0, 0], sizes = [8, 8], strides = [1, 1]} : vector<8x32xf32> to vector<8x8xf32>
    %26 = vector.extract_strided_slice %20 {offsets = [0, 8], sizes = [8, 8], strides = [1, 1]} : vector<8x32xf32> to vector<8x8xf32>
    %27 = vector.extract_strided_slice %20 {offsets = [0, 16], sizes = [8, 8], strides = [1, 1]} : vector<8x32xf32> to vector<8x8xf32>
    %28 = vector.extract_strided_slice %20 {offsets = [0, 24], sizes = [8, 8], strides = [1, 1]} : vector<8x32xf32> to vector<8x8xf32>
    %29 = vector.shape_cast %25 : vector<8x8xf32> to vector<1x8x8xf32>
    %30 = vector.shape_cast %26 : vector<8x8xf32> to vector<1x8x8xf32>
    %31 = vector.shape_cast %27 : vector<8x8xf32> to vector<1x8x8xf32>
    %32 = vector.shape_cast %28 : vector<8x8xf32> to vector<1x8x8xf32>
    %33 = tpu.concatenate %29, %30, %31, %32 in 0 : vector<1x8x8xf32>, vector<1x8x8xf32>, vector<1x8x8xf32>, vector<1x8x8xf32> -> vector<4x8x8xf32>
    %34 = vector.extract_strided_slice %21 {offsets = [0, 0], sizes = [8, 8], strides = [1, 1]} : vector<8x32xf32> to vector<8x8xf32>
    %35 = vector.extract_strided_slice %21 {offsets = [0, 8], sizes = [8, 8], strides = [1, 1]} : vector<8x32xf32> to vector<8x8xf32>
    %36 = vector.extract_strided_slice %21 {offsets = [0, 16], sizes = [8, 8], strides = [1, 1]} : vector<8x32xf32> to vector<8x8xf32>
    %37 = vector.extract_strided_slice %21 {offsets = [0, 24], sizes = [8, 8], strides = [1, 1]} : vector<8x32xf32> to vector<8x8xf32>
    %38 = vector.shape_cast %34 : vector<8x8xf32> to vector<1x8x8xf32>
    %39 = vector.shape_cast %35 : vector<8x8xf32> to vector<1x8x8xf32>
    %40 = vector.shape_cast %36 : vector<8x8xf32> to vector<1x8x8xf32>
    %41 = vector.shape_cast %37 : vector<8x8xf32> to vector<1x8x8xf32>
    %42 = tpu.concatenate %38, %39, %40, %41 in 0 : vector<1x8x8xf32>, vector<1x8x8xf32>, vector<1x8x8xf32>, vector<1x8x8xf32> -> vector<4x8x8xf32>
    %43 = vector.extract_strided_slice %24 {offsets = [0, 0], sizes = [8, 8], strides = [1, 1]} : vector<8x32xf32> to vector<8x8xf32>
    %44 = vector.extract_strided_slice %24 {offsets = [0, 8], sizes = [8, 8], strides = [1, 1]} : vector<8x32xf32> to vector<8x8xf32>
    %45 = vector.extract_strided_slice %24 {offsets = [0, 16], sizes = [8, 8], strides = [1, 1]} : vector<8x32xf32> to vector<8x8xf32>
    %46 = vector.extract_strided_slice %24 {offsets = [0, 24], sizes = [8, 8], strides = [1, 1]} : vector<8x32xf32> to vector<8x8xf32>
    %47 = vector.shape_cast %43 : vector<8x8xf32> to vector<1x8x8xf32>
    %48 = vector.shape_cast %44 : vector<8x8xf32> to vector<1x8x8xf32>
    %49 = vector.shape_cast %45 : vector<8x8xf32> to vector<1x8x8xf32>
    %50 = vector.shape_cast %46 : vector<8x8xf32> to vector<1x8x8xf32>
    %51 = tpu.concatenate %47, %48, %49, %50 in 0 : vector<1x8x8xf32>, vector<1x8x8xf32>, vector<1x8x8xf32>, vector<1x8x8xf32> -> vector<4x8x8xf32>
    %52 = vector.shape_cast %6 : vector<8x8xf32> to vector<1x8x8xf32>
    %53 = tpu.concatenate %52, %52, %52, %52 in 0 : vector<1x8x8xf32>, vector<1x8x8xf32>, vector<1x8x8xf32>, vector<1x8x8xf32> -> vector<4x8x8xf32>
    %cst_15 = arith.constant 0.000000e+00 : f32
    %54 = vector.broadcast %cst_15 : f32 to vector<4x8x8xf32>
    %55 = arith.cmpf one, %53, %54 : vector<4x8x8xf32>
    "tpu.trace_start"() <{level = 10 : i32, message = "gqd,gkd->gqk"}> : () -> ()
    %cst_16 = arith.constant dense<0.000000e+00> : vector<4x8x8xf32>
    %56 = tpu.matmul %33, %42, %cst_16 {dimension_numbers = #tpu.dot_dimension_numbers<[2], [2], [1], [1], [0, 0, 0, 1, 1, 1], [0], [0]>} : vector<4x8x8xf32>, vector<4x8x8xf32>, vector<4x8x8xf32> -> vector<4x8x8xf32>
    "tpu.trace_stop"() : () -> ()
    %cst_17 = arith.constant 0.353553385 : f32
    %57 = vector.broadcast %cst_17 : f32 to vector<4x8x8xf32>
    %58 = arith.mulf %56, %57 : vector<4x8x8xf32>
    %cst_18 = arith.constant -1.000000e+30 : f32
    %59 = vector.broadcast %cst_18 : f32 to vector<4x8x8xf32>
    %60 = arith.select %55, %59, %58 : vector<4x8x8xi1>, vector<4x8x8xf32>
    %cst_19 = arith.constant dense<0xFF800000> : vector<4x8xf32>
    %61 = vector.multi_reduction <maximumf>, %60, %cst_19 [2] : vector<4x8x8xf32> to vector<4x8xf32>
    %62 = vector.shape_cast %61 : vector<4x8xf32> to vector<4x8x1xf32>
    %63 = vector.broadcast %62 : vector<4x8x1xf32> to vector<4x8x8xf32>
    %64 = arith.subf %60, %63 : vector<4x8x8xf32>
    %65 = math.exp %64 : vector<4x8x8xf32>
    %cst_20 = arith.constant 0.000000e+00 : f32
    %66 = vector.broadcast %cst_20 : f32 to vector<4x8x8xf32>
    %67 = arith.select %55, %66, %65 : vector<4x8x8xi1>, vector<4x8x8xf32>
    %cst_21 = arith.constant dense<0.000000e+00> : vector<4x8xf32>
    %68 = vector.multi_reduction <add>, %67, %cst_21 [2] : vector<4x8x8xf32> to vector<4x8xf32>
    %69 = vector.shape_cast %68 : vector<4x8xf32> to vector<4x8x1xf32>
    %cst_22 = arith.constant 0.000000e+00 : f32
    %70 = vector.broadcast %cst_22 : f32 to vector<4x8x1xf32>
    %71 = arith.cmpf ogt, %69, %70 : vector<4x8x1xf32>
    %cst_23 = arith.constant 1.000000e+00 : f32
    %72 = vector.broadcast %cst_23 : f32 to vector<4x8x1xf32>
    %73 = arith.select %71, %69, %72 : vector<4x8x1xi1>, vector<4x8x1xf32>
    %74 = tpu.reciprocal %73 {approx = true} : vector<4x8x1xf32> -> vector<4x8x1xf32>
    %75 = vector.broadcast %74 : vector<4x8x1xf32> to vector<4x8x8xf32>
    %76 = arith.mulf %67, %75 : vector<4x8x8xf32>
    "tpu.trace_start"() <{level = 10 : i32, message = "gqk,gkd->gqd"}> : () -> ()
    %cst_24 = arith.constant dense<0.000000e+00> : vector<4x8x8xf32>
    %77 = tpu.matmul %76, %51, %cst_24 {dimension_numbers = #tpu.dot_dimension_numbers<[2], [1], [1], [2], [0, 0, 0, 1, 1, 2], [0], [0]>} : vector<4x8x8xf32>, vector<4x8x8xf32>, vector<4x8x8xf32> -> vector<4x8x8xf32>
    %cst_25 = arith.constant 0.000000e+00 : f32
    "tpu.trace_stop"() : () -> ()
    %78 = vector.broadcast %cst_25 : f32 to vector<8x96xf32>
    %79 = vector.extract_strided_slice %77 {offsets = [0, 0, 0], sizes = [1, 8, 8], strides = [1, 1, 1]} : vector<4x8x8xf32> to vector<1x8x8xf32>
    %80 = vector.shape_cast %79 : vector<1x8x8xf32> to vector<8x8xf32>
    %c0_26 = arith.constant 0 : index
    %c0_27 = arith.constant 0 : index
    %81 = vector.load %arg7[%c0_26, %c0_27] : memref<32x96xf32, #tpu.memory_space<vmem>>, vector<8x96xf32>
    %cst_28 = arith.constant dense<0.000000e+00> : vector<8x96xf32>
    %82 = tpu.matmul %80, %81, %cst_28 {dimension_numbers = #tpu.dot_dimension_numbers<[1], [0], [0], [1], [0, 0, 1, 1], [], []>} : vector<8x8xf32>, vector<8x96xf32>, vector<8x96xf32> -> vector<8x96xf32>
    %83 = arith.addf %78, %82 : vector<8x96xf32>
    %84 = vector.extract_strided_slice %77 {offsets = [1, 0, 0], sizes = [1, 8, 8], strides = [1, 1, 1]} : vector<4x8x8xf32> to vector<1x8x8xf32>
    %85 = vector.shape_cast %84 : vector<1x8x8xf32> to vector<8x8xf32>
    %c8 = arith.constant 8 : index
    %c0_29 = arith.constant 0 : index
    %86 = vector.load %arg7[%c8, %c0_29] : memref<32x96xf32, #tpu.memory_space<vmem>>, vector<8x96xf32>
    %cst_30 = arith.constant dense<0.000000e+00> : vector<8x96xf32>
    %87 = tpu.matmul %85, %86, %cst_30 {dimension_numbers = #tpu.dot_dimension_numbers<[1], [0], [0], [1], [0, 0, 1, 1], [], []>} : vector<8x8xf32>, vector<8x96xf32>, vector<8x96xf32> -> vector<8x96xf32>
    %88 = arith.addf %83, %87 : vector<8x96xf32>
    %89 = vector.extract_strided_slice %77 {offsets = [2, 0, 0], sizes = [1, 8, 8], strides = [1, 1, 1]} : vector<4x8x8xf32> to vector<1x8x8xf32>
    %90 = vector.shape_cast %89 : vector<1x8x8xf32> to vector<8x8xf32>
    %c16 = arith.constant 16 : index
    %c0_31 = arith.constant 0 : index
    %91 = vector.load %arg7[%c16, %c0_31] : memref<32x96xf32, #tpu.memory_space<vmem>>, vector<8x96xf32>
    %cst_32 = arith.constant dense<0.000000e+00> : vector<8x96xf32>
    %92 = tpu.matmul %90, %91, %cst_32 {dimension_numbers = #tpu.dot_dimension_numbers<[1], [0], [0], [1], [0, 0, 1, 1], [], []>} : vector<8x8xf32>, vector<8x96xf32>, vector<8x96xf32> -> vector<8x96xf32>
    %93 = arith.addf %88, %92 : vector<8x96xf32>
    %94 = vector.extract_strided_slice %77 {offsets = [3, 0, 0], sizes = [1, 8, 8], strides = [1, 1, 1]} : vector<4x8x8xf32> to vector<1x8x8xf32>
    %95 = vector.shape_cast %94 : vector<1x8x8xf32> to vector<8x8xf32>
    %c24 = arith.constant 24 : index
    %c0_33 = arith.constant 0 : index
    %96 = vector.load %arg7[%c24, %c0_33] : memref<32x96xf32, #tpu.memory_space<vmem>>, vector<8x96xf32>
    %cst_34 = arith.constant dense<0.000000e+00> : vector<8x96xf32>
    %97 = tpu.matmul %95, %96, %cst_34 {dimension_numbers = #tpu.dot_dimension_numbers<[1], [0], [0], [1], [0, 0, 1, 1], [], []>} : vector<8x8xf32>, vector<8x96xf32>, vector<8x96xf32> -> vector<8x96xf32>
    %98 = arith.addf %93, %97 : vector<8x96xf32>
    %c0_35 = arith.constant 0 : index
    %c0_36 = arith.constant 0 : index
    %99 = vector.load %arg8[%c0_35, %c0_36] : memref<32x96xf32, #tpu.memory_space<vmem>>, vector<32x96xf32>
    %cst_37 = arith.constant dense<0.000000e+00> : vector<8x96xf32>
    %100 = tpu.matmul %1, %99, %cst_37 {dimension_numbers = #tpu.dot_dimension_numbers<[1], [0], [0], [1], [0, 0, 1, 1], [], []>} : vector<8x32xf32>, vector<32x96xf32>, vector<8x96xf32> -> vector<8x96xf32>
    %c0_38 = arith.constant 0 : index
    %c0_39 = arith.constant 0 : index
    %101 = vector.load %arg9[%c0_38, %c0_39] : memref<1x96xf32, #tpu.memory_space<vmem>>, vector<1x96xf32>
    %102 = vector.broadcast %101 : vector<1x96xf32> to vector<8x96xf32>
    %103 = arith.addf %100, %102 : vector<8x96xf32>
    %104 = vector.extract_strided_slice %19 {offsets = [0, 96], sizes = [8, 32], strides = [1, 1]} : vector<8x192xf32> to vector<8x32xf32>
    %105 = vector.extract_strided_slice %98 {offsets = [0, 0], sizes = [8, 32], strides = [1, 1]} : vector<8x96xf32> to vector<8x32xf32>
    %106 = arith.addf %104, %105 : vector<8x32xf32>
    %107 = vector.extract_strided_slice %103 {offsets = [0, 0], sizes = [8, 32], strides = [1, 1]} : vector<8x96xf32> to vector<8x32xf32>
    %108 = arith.addf %106, %107 : vector<8x32xf32>
    %109 = arith.negf %108 : vector<8x32xf32>
    %110 = math.exp %109 : vector<8x32xf32>
    %cst_40 = arith.constant 1.000000e+00 : f32
    %111 = vector.broadcast %cst_40 : f32 to vector<8x32xf32>
    %112 = arith.addf %111, %110 : vector<8x32xf32>
    %113 = arith.divf %111, %112 : vector<8x32xf32>
    %114 = vector.extract_strided_slice %19 {offsets = [0, 128], sizes = [8, 32], strides = [1, 1]} : vector<8x192xf32> to vector<8x32xf32>
    %115 = vector.extract_strided_slice %98 {offsets = [0, 32], sizes = [8, 32], strides = [1, 1]} : vector<8x96xf32> to vector<8x32xf32>
    %116 = arith.addf %114, %115 : vector<8x32xf32>
    %117 = vector.extract_strided_slice %103 {offsets = [0, 32], sizes = [8, 32], strides = [1, 1]} : vector<8x96xf32> to vector<8x32xf32>
    %118 = arith.addf %116, %117 : vector<8x32xf32>
    %119 = arith.negf %118 : vector<8x32xf32>
    %120 = math.exp %119 : vector<8x32xf32>
    %cst_41 = arith.constant 1.000000e+00 : f32
    %121 = vector.broadcast %cst_41 : f32 to vector<8x32xf32>
    %122 = arith.addf %121, %120 : vector<8x32xf32>
    %123 = arith.divf %121, %122 : vector<8x32xf32>
    %124 = vector.extract_strided_slice %19 {offsets = [0, 160], sizes = [8, 32], strides = [1, 1]} : vector<8x192xf32> to vector<8x32xf32>
    %125 = vector.extract_strided_slice %98 {offsets = [0, 64], sizes = [8, 32], strides = [1, 1]} : vector<8x96xf32> to vector<8x32xf32>
    %126 = arith.addf %124, %125 : vector<8x32xf32>
    %127 = vector.extract_strided_slice %103 {offsets = [0, 64], sizes = [8, 32], strides = [1, 1]} : vector<8x96xf32> to vector<8x32xf32>
    %128 = arith.mulf %113, %127 : vector<8x32xf32>
    %129 = arith.addf %126, %128 : vector<8x32xf32>
    %130 = math.tanh %129 : vector<8x32xf32>
    %cst_42 = arith.constant 1.000000e+00 : f32
    %131 = vector.broadcast %cst_42 : f32 to vector<8x32xf32>
    %132 = arith.subf %131, %123 : vector<8x32xf32>
    %133 = arith.mulf %132, %130 : vector<8x32xf32>
    %134 = arith.mulf %123, %1 : vector<8x32xf32>
    %135 = arith.addf %133, %134 : vector<8x32xf32>
    %cst_43 = arith.constant 0.000000e+00 : f32
    %136 = vector.shape_cast %5 : vector<8x1xi1> to vector<8x1xi1>
    %137 = vector.broadcast %136 : vector<8x1xi1> to vector<8x32xi1>
    %138 = vector.broadcast %cst_43 : f32 to vector<8x32xf32>
    %139 = arith.select %137, %138, %135 : vector<8x32xi1>, vector<8x32xf32>
    %c0_44 = arith.constant 0 : index
    %c0_45 = arith.constant 0 : index
    %140 = vector.load %arg10[%c0_44, %c0_45] : memref<32x6xf32, #tpu.memory_space<vmem>>, vector<32x6xf32>
    %cst_46 = arith.constant dense<0.000000e+00> : vector<8x6xf32>
    %141 = tpu.matmul %139, %140, %cst_46 {dimension_numbers = #tpu.dot_dimension_numbers<[1], [0], [0], [1], [0, 0, 1, 1], [], []>} : vector<8x32xf32>, vector<32x6xf32>, vector<8x6xf32> -> vector<8x6xf32>
    %c0_47 = arith.constant 0 : index
    %c0_48 = arith.constant 0 : index
    %142 = vector.load %arg11[%c0_47, %c0_48] : memref<8x6xf32, #tpu.memory_space<vmem>>, vector<8x6xf32>
    %cst_49 = arith.constant dense<0.000000e+00> : vector<8x6xf32>
    %143 = tpu.matmul %2, %142, %cst_49 {dimension_numbers = #tpu.dot_dimension_numbers<[1], [0], [0], [1], [0, 0, 1, 1], [], []>} : vector<8x8xf32>, vector<8x6xf32>, vector<8x6xf32> -> vector<8x6xf32>
    %144 = arith.addf %141, %143 : vector<8x6xf32>
    %c0_50 = arith.constant 0 : index
    %c0_51 = arith.constant 0 : index
    %145 = vector.load %arg12[%c0_50, %c0_51] : memref<1x6xf32, #tpu.memory_space<vmem>>, vector<1x6xf32>
    %146 = vector.broadcast %145 : vector<1x6xf32> to vector<8x6xf32>
    %147 = arith.addf %144, %146 : vector<8x6xf32>
    %cst_52 = arith.constant 0.000000e+00 : f32
    %148 = vector.shape_cast %5 : vector<8x1xi1> to vector<8x1xi1>
    %149 = vector.broadcast %148 : vector<8x1xi1> to vector<8x6xi1>
    %150 = vector.broadcast %cst_52 : f32 to vector<8x6xf32>
    %151 = arith.select %149, %150, %147 : vector<8x6xi1>, vector<8x6xf32>
    %cst_53 = arith.constant 0.000000e+00 : f32
    %152 = vector.broadcast %cst_53 : f32 to vector<8x90xf32>
    %153 = tpu.concatenate %151, %139, %152 in 1 : vector<8x6xf32>, vector<8x32xf32>, vector<8x90xf32> -> vector<8x128xf32>
    %c0_54 = arith.constant 0 : index
    %c0_55 = arith.constant 0 : index
    %154 = vector.load %arg13[%c0_54, %c0_55] : memref<8x128xf32, #tpu.memory_space<vmem>>, vector<8x128xf32>
    tpu.vector_store %arg13[%c0_54, %c0_55], %153 {strides = array<i32>} : memref<8x128xf32, #tpu.memory_space<vmem>>, vector<8x128xf32>,
    return
  }
  func.func @transform_0(%arg0: i32) -> (i32, i32) {
    %c0_i32 = arith.constant 0 : i32
    %c0_i32_0 = arith.constant 0 : i32
    return %arg0, %c0_i32 : i32, i32
  }
  func.func @transform_1(%arg0: i32) -> (i32, i32) {
    %c0_i32 = arith.constant 0 : i32
    %c0_i32_0 = arith.constant 0 : i32
    return %arg0, %c0_i32 : i32, i32
  }
  func.func @transform_2(%arg0: i32) -> (i32, i32) {
    %c0_i32 = arith.constant 0 : i32
    %c0_i32_0 = arith.constant 0 : i32
    %c0_i32_1 = arith.constant 0 : i32
    return %c0_i32, %c0_i32_0 : i32, i32
  }
  func.func @transform_3(%arg0: i32) -> (i32, i32) {
    %c0_i32 = arith.constant 0 : i32
    %c0_i32_0 = arith.constant 0 : i32
    %c0_i32_1 = arith.constant 0 : i32
    return %c0_i32, %c0_i32_0 : i32, i32
  }
  func.func @transform_4(%arg0: i32) -> (i32, i32) {
    %c0_i32 = arith.constant 0 : i32
    %c0_i32_0 = arith.constant 0 : i32
    %c0_i32_1 = arith.constant 0 : i32
    return %c0_i32, %c0_i32_0 : i32, i32
  }
  func.func @transform_5(%arg0: i32) -> (i32, i32) {
    %c0_i32 = arith.constant 0 : i32
    %c0_i32_0 = arith.constant 0 : i32
    %c0_i32_1 = arith.constant 0 : i32
    return %c0_i32, %c0_i32_0 : i32, i32
  }
  func.func @transform_6(%arg0: i32) -> (i32, i32) {
    %c0_i32 = arith.constant 0 : i32
    %c0_i32_0 = arith.constant 0 : i32
    %c0_i32_1 = arith.constant 0 : i32
    return %c0_i32, %c0_i32_0 : i32, i32
  }
  func.func @transform_7(%arg0: i32) -> (i32, i32) {
    %c0_i32 = arith.constant 0 : i32
    %c0_i32_0 = arith.constant 0 : i32
    %c0_i32_1 = arith.constant 0 : i32
    return %c0_i32, %c0_i32_0 : i32, i32
  }
  func.func @transform_8(%arg0: i32) -> (i32, i32) {
    %c0_i32 = arith.constant 0 : i32
    %c0_i32_0 = arith.constant 0 : i32
    %c0_i32_1 = arith.constant 0 : i32
    return %c0_i32, %c0_i32_0 : i32, i32
  }
  func.func @transform_9(%arg0: i32) -> (i32, i32) {
    %c0_i32 = arith.constant 0 : i32
    %c0_i32_0 = arith.constant 0 : i32
    %c0_i32_1 = arith.constant 0 : i32
    return %c0_i32, %c0_i32_0 : i32, i32
  }
  func.func @transform_10(%arg0: i32) -> (i32, i32) {
    %c0_i32 = arith.constant 0 : i32
    %c0_i32_0 = arith.constant 0 : i32
    %c0_i32_1 = arith.constant 0 : i32
    return %c0_i32, %c0_i32_0 : i32, i32
  }
  func.func @transform_11(%arg0: i32) -> (i32, i32) {
    %c0_i32 = arith.constant 0 : i32
    %c0_i32_0 = arith.constant 0 : i32
    %c0_i32_1 = arith.constant 0 : i32
    return %c0_i32, %c0_i32_0 : i32, i32
  }
  func.func @transform_12(%arg0: i32) -> (i32, i32) {
    %c0_i32 = arith.constant 0 : i32
    %c0_i32_0 = arith.constant 0 : i32
    return %arg0, %c0_i32 : i32, i32
  }
}

</mosaic_0001>

<bundles_post_ra>
// kernel: tpu_custom_call.1
= control target key start
LH: loop header
LB: loop body
LE: loop exit
PB: predicated region body
PF: predicated region fallthrough
CT: control target
= control target key end

     0   :  { %s2389_s0 = inlined_call_operand.hbm [shape: f32[16,16], index: 0, kind: input, shape index: {}]   ;;  %s2390_s1 = inlined_call_operand.hbm [shape: f32[16,49], index: 1, kind: input, shape index: {}]   ;;  %s2391_s2 = inlined_call_operand.hbm [shape: f32[16,32], index: 2, kind: input, shape index: {}]   ;;  %s2392_s3 = inlined_call_operand.hbm [shape: f32[1,32], index: 3, kind: input, shape index: {}]   ;;  %s2393_s4 = inlined_call_operand.hbm [shape: f32[32,192], index: 4, kind: input, shape index: {}]   ;;  %s2394_s5 = inlined_call_operand.hbm [shape: f32[1,192], index: 5, kind: input, shape index: {}]   ;;  %s2395_s6 = inlined_call_operand.vmem [shape: f32[32,96], index: 6, kind: input, shape index: {}]   ;;  %s2396_s7 = inlined_call_operand.hbm [shape: f32[32,96], index: 7, kind: input, shape index: {}]   ;;  %s2397_s8 = inlined_call_operand.hbm [shape: f32[1,96], index: 8, kind: input, shape index: {}]   ;;  %s2398_s9 = inlined_call_operand.vmem [shape: f32[32,6], index: 9, kind: input, shape index: {}]   ;;  %s2399_s10 = inlined_call_operand.vmem [shape: f32[8,6], index: 10, kind: input, shape index: {}]   ;;  %s2400_s11 = inlined_call_operand.vmem [shape: f32[1,6], index: 11, kind: input, shape index: {}]   ;;  %s2401_s12 = inlined_call_operand.hbm [shape: f32[16,128], index: 12, kind: output, shape index: {}]  }
   0x1   :  { %2406 = sst [smem:[#allocation27_spill]] %s2391_s2 }
   0x2   :  { %2407 = sst [smem:[#allocation28_spill]] %s2392_s3 }
   0x3   :  { %2408 = sst [smem:[#allocation29_spill]] %s2393_s4 }
   0x4   :  { %2409 = sst [smem:[#allocation30_spill]] %s2394_s5 }
   0x5   :  { %2410 = sst [smem:[#allocation31_spill]] %s2396_s7 }
   0x6   :  { %2411 = sst [smem:[#allocation32_spill]] %s2397_s8 }
   0x7   :  { %2412 = sst [smem:[#allocation33_spill]] %s2400_s11 }
   0x8   :  { %2413 = sst [smem:[#allocation34_spill]] %s2401_s12 }
   0x9   :  { %17 = vsyncpa [#allocation3], 0 }
   0xa   :  { %19 = vsyncpa [#allocation3 + $0x1], 0 }
   0xb   :  { %20 = vsyncpa [#allocation6], 0 }
   0xc   :  { %22 = vsyncpa [#allocation6 + $0x1], 0 }
   0xd   :  { %23 = vsyncpa [#allocation9], 0 }
   0xe   :  { %24 = vsyncpa [#allocation12], 0 }
   0xf   :  { %25 = vsyncpa [#allocation15], 0 }
  0x10   :  { %26 = vsyncpa [#allocation4], 0 }
  0x11   :  { %28 = vsyncpa [#allocation4 + $0x1], 0  ;;  %s2046_s21 = smov 0   ;;  %s2048_s22 = smov 0  }
  0x12   :  { %s2050_s23 = smov 0   ;;  %s2052_s24 = smov 0  }
  0x13 LB: > { %2414 = sst [smem:[#allocation24_spill]] %s1954_s23  ;;  %s2070_s28 = sadd.s32 4294967295, %s1958_s24   ;;  %s1958_s24 = sphi %s2052_s24, %s2434_s24   ;;  %s1954_s23 = sphi %s2050_s23, %s2436_s23   ;;  %s1950_s22 = sphi %s2048_s22, %s2438_s22   ;;  %s1946_s21 = sphi %s2046_s21, %s2437_s21  }
  0x14   : > { %s2415_s2 = sld [smem:[#allocation27_spill]]  ;;  %p1420_p0 = scmp.ge.s32.totalorder %s1958_s24, 1 }
  0x15   : > { %p55_p1 = scmp.eq.s32.totalorder %s2070_s28, 0  ;;  %p327_p2 = scmp.lt.s32.totalorder %s1958_s24, 3 }
  0x16   : > { %s1960_s30 = smov [#allocation7]   ;;  %s2417_s3 = sld [smem:[#allocation28_spill]] }
  0x17   : > { %p2075_p3 = pnand %p1420_p0, %p327_p2  ;;  %s340_s13 = sshll.u32 %s1960_s30, 4  ;;  %s341_s13 = int_to_ptr.vmem [resolvable:$true] %s340_s13 }
  0x18   : > { %s2419_s5 = sld [smem:[#allocation30_spill]]  ;;  %s1961_s25 = smov [#allocation8]  }
  0x19   : > { %p1500_p4 = pneg %p2075_p3  ;;  %s355_s26 = sshll.u32 %s1961_s25, 4  ;;  %s356_s26 = int_to_ptr.vmem [resolvable:$true] %s355_s26 }
  0x1a   : > { %s338_s27 = sshll.u32 %s2415_s2, 4  ;;  %s1962_s30 = smov 128   ;;  %s339_s27 = int_to_ptr.hbm [resolvable:$true] %s338_s27 }
  0x1b   : > { %p2087_p6 = pnand %p1500_p4, %p55_p1  ;;  %s1963_s2 = smov 8  }
  0x1c   : > { %s353_s16 = sshll.u32 %s2417_s3, 4  ;;  %s2420_s4 = sld [smem:[#allocation29_spill]]  ;;  %s354_s16 = int_to_ptr.hbm [resolvable:$true] %s353_s16 }
  0x1d   : > { %1503 = dma.hbm_to_vmem [thread:$0]  (!%p2087_p6), %s339_s27, 256, %s341_s13, [#allocation6], %s1962_s30, %s1962_s30, %s1963_s2  }
  0x1e   : > { %s379_s20 = sshll.u32 %s2419_s5, 4  ;;  %s1964_s12 = smov [#allocation11]   ;;  %s380_s20 = int_to_ptr.hbm [resolvable:$true] %s379_s20 }
  0x1f   : > { %1506 = dma.hbm_to_vmem [thread:$0]  (!%p2087_p6), %s354_s16, 16, %s356_s26, [#allocation9]  }
  0x20   : > { %s381_s11 = sshll.u32 %s1964_s12, 4  ;;  %s1965_s18 = smov [#allocation10]   ;;  %s382_s11 = int_to_ptr.vmem [resolvable:$true] %s381_s11 }
  0x21   : > { %1512 = dma.hbm_to_vmem [thread:$0]  (!%p2087_p6), %s380_s20, 32, %s382_s11, [#allocation12]  }
  0x22   : > { %s364_s3 = sshll.u32 %s2420_s4, 4  ;;  %s366_s19 = sshll.u32 %s1965_s18, 4  ;;  %s365_s3 = int_to_ptr.hbm [resolvable:$true] %s364_s3  ;;  %s367_s19 = int_to_ptr.vmem [resolvable:$true] %s366_s19 }
  0x23   : > { %s1966_s27 = smov 256   ;;  %s1967_s13 = smov 16  }
  0x24   : > { %1509 = dma.hbm_to_vmem [thread:$0]  (!%p2087_p6), %s365_s3, 1024, %s367_s19, [#allocation9], %s1966_s27, %s1966_s27, %s1967_s13  }
  0x25   : > { %s2421_s7 = sld [smem:[#allocation31_spill]]  ;;  %s1968_s11 = smov [#allocation13]  }
  0x26   : > { %s395_s20 = sshll.u32 %s1968_s11, 4  ;;  %s2422_s8 = sld [smem:[#allocation32_spill]]  ;;  %s396_s20 = int_to_ptr.vmem [resolvable:$true] %s395_s20 }
  0x27   : > { %s1969_s3 = smov [#allocation14]   ;;  %s1419_s19 = sadd.s32 4294967294, %s1958_s24  }
  0x28   : > { %s410_s18 = sshll.u32 %s1969_s3, 4  ;;  %s2117_s27 = sadd.s32 1, %s1958_s24   ;;  %s411_s18 = int_to_ptr.vmem [resolvable:$true] %s410_s18 }
  0x29   : > { %2423 = sst [smem:[#allocation25_spill]] %s2117_s27  ;;  %s38_s13 = ssub.s32 %s1958_s24, %s2117_s27 }
  0x2a   : > { %s41_s16 = sadd.s32 1, %s1954_s23  ;;  %p39_p7 = scmp.eq.s32.totalorder %s38_s13, 0 }
  0x2b   : > { %s393_s12 = sshll.u32 %s2421_s7, 4  ;;  %p48_p8 = scmp.ne.s32.totalorder %s1954_s23, %s1950_s22  ;;  %s394_s12 = int_to_ptr.hbm [resolvable:$true] %s393_s12 }
  0x2c   : > { %s408_s15 = sshll.u32 %s2422_s8, 4  ;;  %p49_p9 = scmp.eq.s32.totalorder %s1958_s24, 0  ;;  %s409_s15 = int_to_ptr.hbm [resolvable:$true] %s408_s15 }
  0x2d   : > { %1515 = dma.hbm_to_vmem [thread:$0]  (!%p2087_p6), %s394_s12, 512, %s396_s20, [#allocation12], %s1962_s30, %s1962_s30, %s1963_s2  }
  0x2e   : > { %1518 = dma.hbm_to_vmem [thread:$0]  (!%p2087_p6), %s409_s15, 16, %s411_s18, [#allocation15]  }
  0x2f   : > { %p54_p10 = scmp.ne.s32.totalorder %s1950_s22, %s1946_s21  ;;  %p2130_p11 = por %p49_p9, %p48_p8 }
  0x30   : > { %s2128_s2 = scalar_select %p39_p7, %s1954_s23, %s41_s16  }
  0x31   : > { %p2136_p12 = por %p55_p1, %p54_p10  ;;  %p314_p13 = scmp.eq.s32.totalorder %s2070_s28, 1 }
  0x32   : > { %2424 = sst [smem:[#allocation26_spill]] %s2128_s2  ;;  %p320_p0 = scmp.eq.s32.totalorder %s1419_s19, 1 }
  0x33   : > { %p1536_p2 = scmp.lt.s32.totalorder %s1958_s24, 2  ;;  %s430_s25 = sand.u32 1, %s1954_s23  }
  0x34   : > { %p2143_p4 = por %p314_p13, %p48_p8  ;;  %p2147_p6 = por %p320_p0, %p54_p10 }
  0x35   : > { %s2151_s20 = sshll.u32 %s430_s25, 3  ;;  %s1429_s26 = sshll.u32 %s1958_s24, 3 }
  0x36   : > { %s438_s3 = scalar_lea.hbm %s2389_s0, %s1429_s26  ;;  %s434_s18 = scalar_lea.vmem [#allocation2], %s2151_s20 }
  0x37   : > { %s442_s19 = sshll.u32 %s434_s18, 4  ;;  %s440_s13 = sshll.u32 %s438_s3, 4  ;;  %s443_s19 = int_to_ptr.vmem [resolvable:$true] %s442_s19  ;;  %s441_s13 = int_to_ptr.hbm [resolvable:$true] %s440_s13 }
  0x38   : > { %p2160_p7 = pnand %p1536_p2, %p2130_p11  ;;  %s457_s7 = scalar_lea.hbm %s2390_s1, %s1429_s26 }
  0x39   : > { %s449_s8 = sand.u32 1, %s1958_s24   ;;  %s431_s2 = scalar_lea.sflag [#allocation3], %s430_s25 }
  0x3a   : > { %s1812_s14 = sshra.s32 %s441_s13, 4  ;;  %p1816_p9 = pneg %p2160_p7  ;;  %s1813_s14 = int_to_ptr.hbm [resolvable:$true] %s1812_s14 }
  0x3b   : > { %s1814_s15 = scalar_lea.hbm %s1813_s14, 8  ;;  %s1819_s18 = scalar_lea.hbm %s2389_s0, 16 }
  0x3c   : > { %p1815_p8 = scmp.ne.s32.totalorder %s1813_s14, %s1814_s15  ;;  %p1820_p13 = scmp.lt.s32.totalorder %s1813_s14, %s2389_s0 }
  0x3d   : > { %p1821_p0 = scmp.lt.s32.totalorder %s1819_s18, %s1814_s15 }
  0x3e   : > { %p1817_p10 = pnand %p1816_p9, %p1815_p8 }
  0x3f   : > { %p1822_p2 = por %p1821_p0, %p1820_p13 }
  0x40   : > { %p1818_p11 = pneg %p1817_p10 }
  0x42   : > { %p1823_p5 = pnand %p1822_p2, %p1818_p11 }
  0x44   : > { %1826 = shalt.err (!%p1823_p5)
}
  0x45   : > { %1522 = dma.hbm_to_vmem [thread:$0]  (!%p2160_p7), %s441_s13, 128, %s443_s19, %s431_s2  }
  0x46   : > { %s459_s25 = sshll.u32 %s457_s7, 4  ;;  %s453_s26 = scalar_lea.vmem [#allocation5], %s2151_s20  ;;  %s460_s25 = int_to_ptr.hbm [resolvable:$true] %s459_s25 }
  0x47   : > { %s461_s23 = sshll.u32 %s453_s26, 4  ;;  %s450_s30 = scalar_lea.sflag [#allocation6], %s449_s8  ;;  %s462_s23 = int_to_ptr.vmem [resolvable:$true] %s461_s23 }
  0x48   : > { %s1842_s3 = sshra.s32 %s460_s25, 4  ;;  %s1849_s18 = scalar_lea.hbm %s2390_s1, 16  ;;  %s1843_s3 = int_to_ptr.hbm [resolvable:$true] %s1842_s3 }
  0x49   : > { %s1844_s27 = scalar_lea.hbm %s1843_s3, 8  ;;  %p1850_p5 = scmp.lt.s32.totalorder %s1843_s3, %s2390_s1 }
  0x4a   : > { %p1845_p8 = scmp.ne.s32.totalorder %s1843_s3, %s1844_s27  ;;  %p1851_p13 = scmp.lt.s32.totalorder %s1849_s18, %s1844_s27 }
  0x4c   : > { %p1847_p10 = pnand %p1845_p8, %p1816_p9  ;;  %p1852_p0 = por %p1851_p13, %p1850_p5 }
  0x4e   : > { %p1848_p11 = pneg %p1847_p10 }
  0x50   : > { %p1853_p2 = pnand %p1852_p0, %p1848_p11 }
  0x52   : > { %1856 = shalt.err (!%p1853_p2)
}
  0x53   : > { %1525 = dma.hbm_to_vmem [thread:$0]  (!%p2160_p7), %s460_s25, 128, %s462_s23, %s450_s30  }
  0x54   : > { %470 = sbr.rel (%p2075_p3) target bundleno = 2095 (0x82f), region = 68  ;;  %s2196_s7 = sand.u32 (!%p2075_p3), 1, %s1950_s22  }
  0x55   : > { %s2199_s8 = sshll.u32 (!%p2075_p3), %s2196_s7, 3  ;;  %s473_s20 = scalar_lea.sflag (!%p2075_p3), [#allocation3], %s2196_s7 }
  0x56   : > { %s476_s27 = scalar_lea.vmem (!%p2075_p3), [#allocation2], %s2199_s8 }
  0x59   : > { %1917 = dma.done.wait (%p2136_p12), %s473_s20, 128  }
  0x5a   : > { %1919 = vsyncadd (%p2136_p12), %s473_s20, 4294967168  ;;  %s482_s23 = sand.u32 1, %s2070_s28   ;;  %s486_s19 = scalar_lea.vmem [#allocation5], %s2199_s8 }
  0x5b   : > { %s483_s29 = scalar_lea.sflag [#allocation6], %s482_s23 }
  0x5c   : > { %1921 = dma.done.wait (%p2136_p12), %s483_s29, 128  }
  0x5d   : > { %1923 = vsyncadd (%p2136_p12), %s483_s29, 4294967168 }
  0x5e   : > { %1925 = dma.done.wait (%p55_p1), [#allocation6], 256  }
  0x5f   : > { %1927 = vsyncadd (%p55_p1), [#allocation6], 4294967040 }
  0x60   : > { %1929 = dma.done.wait (%p55_p1), [#allocation9], 1040  }
  0x61   : > { %1931 = vsyncadd (%p55_p1), [#allocation9], 4294966256 }
  0x62   : > { %1933 = dma.done.wait (%p55_p1), [#allocation12], 544  }
  0x63   : > { %1935 = vsyncadd (%p55_p1), [#allocation12], 4294966752 }
  0x64   : > { %1937 = dma.done.wait (%p55_p1), [#allocation15], 16  }
  0x65   : > { %1939 = vsyncadd (%p55_p1), [#allocation15], 4294967280  ;;  %v567_v0 = vld [vmem:[#allocation7 + $0x8] sm:$0xff]  ;;  %v566_v1 = vld [vmem:[#allocation7] sm:$0xff]  ;;  %vm572_vm0 = vcmask 130048   ;;  %vm611_vm1 = vcmask 261120  }
  0x66   : > { %v565_v2 = vld [vmem:[%s476_s27] sm:$0xff]  ;;  %590 = vmatpush.msra.mxu0 %v567_v0  ;;  %v601_v5 = vld [vmem:[#allocation10 + $0x20] sm:$0xff]  ;;  %v1603_v11 = vld [vmem:[#allocation8] ss:$0 sm:$0xff]  ;;  %s1970_s17 = smov 104   ;;  %s1971_s13 = smov 112  }
  0x67   : > { %v603_v3 = vld [vmem:[#allocation10 + $0x30] sm:$0xff]  ;;  %v604_v4 = vld [vmem:[#allocation10 + $0x38] sm:$0xff]  ;;  %v602_v6 = vld [vmem:[#allocation10 + $0x28] sm:$0xff]  ;;  %s1972_s16 = smov 96   ;;  %s1973_s5 = smov 120   ;;  %vm672_vm2 = vcmask 64512  }
  0x68   : > { %627 = vmatpush.msra.mxu1 %v603_v3  ;;  %647 = vmatpush.msra.mxu2 %v604_v4  ;;  %v599_v7 = vld [vmem:[#allocation10 + $0x10] sm:$0xff]  ;;  %v600_v8 = vld [vmem:[#allocation10 + $0x18] sm:$0xff]  ;;  %v597_v9 = vld [vmem:[#allocation10] sm:$0xff]  ;;  %s1974_s25 = smov 41   ;;  %vm799_vm4 = vcmask 400712   ;;  %s1975_s26 = smov 87  }
  0x69   : > { %591 = vmatpush.msra.mxu0 %v566_v1  ;;  %v598_v10 = vld [vmem:[#allocation10 + $0x8] sm:$0xff]  ;;  %v2231_v15 = vld [vmem:[#allocation11] sm:$0x3]  ;;  %s1976_s30 = smov 64   ;;  %s1977_s23 = smov 32  }
  0x6a   : > { %1442 = vmatmul.msk.f32.vlgmr.msra.gmra.mxu0 %vm572_vm0, %v565_v2  ;;  %628 = vmatpush.msra.mxu1 %v601_v5  ;;  %v607_v16 = vperm.slane %v2231_v15, 0  ;;  %v2258_v34 = vld [vmem:[%s486_s19] sm:$0xff]  ;;  %s1980_s14 = smov 6   ;;  %s1467_s15 = sshll.u32 %s2070_s28, 3 }
  0x6b   : > { %648 = vmatpush.msra.mxu2 %v602_v6  ;;  %vm564_vm3 = vcmp.ne.f32.partialorder %v2258_v34, 0.0  ;;  %s2430_s2 = sld [smem:[#allocation33_spill]]  ;;  %s1254_s28 = scalar_lea.sflag [#allocation4], %s2196_s7 }
  0x6c   : > { %629 = vmatpush.msra.mxu1 %v599_v7 }
  0x6d   : > { %649 = vmatpush.msra.mxu2 %v600_v8 }
  0x6e   : > { %630 = vmatpush.msra.mxu1 %v597_v9 }
  0x6f   : > { %650 = vmatpush.msra.mxu2 %v598_v10 }
  0xe7   : > { %v593_v12 = vpop.f32.mrf.mxu0 }
  0xe8   : > { %v594_v13 = vadd.f32 %v1603_v11, %v593_v12 }
  0xea   : > { %v596_v14 = vmax.f32 %v594_v13, 0.0 }
  0xec   : > { %1443 = vmatmul.msk.f32.vlgmr.msra.gmra.mxu1 %vm611_vm1, %v596_v14  ;;  %1444 = vmatmul.msk.f32.vlgmr.msra.gmra.mxu2 %vm611_vm1, %v596_v14 }
 0x169   : > { %v632_v17 = vpop.f32.mrf.mxu1 }
 0x16a   : > { %v2234_v18 = vadd.f32 %v632_v17, %v607_v16 }
 0x16c   : > { %661 = vrot.lane.b32.xlu1 %v2234_v18, %s1970_s17  ;;  %659 = vrot.lane.b32.xlu0 %v2234_v18, %s1971_s13  ;;  %v655_v9 = vmax.f32 %v2234_v18, 0.0 }
 0x174   : > { %670 = vrot.lane.b32.xlu1 %v2234_v18, %s1972_s16  ;;  %657 = vrot.lane.b32.xlu0 %v2234_v18, %s1973_s5 }
 0x1de   : > { %v662_v19 = vpop.permute.xlu1 %661  ;;  %v660_v20 = vpop.permute.xlu0 %659 }
 0x1df   : > { %749 = vrot.lane.b32.xlu0 %v662_v19, %s1972_s16  ;;  %723 = vrot.lane.b32.xlu2 %v660_v20, %s1972_s16 }
 0x1e6   : > { %v671_v21 = vpop.permute.xlu1 %670  ;;  %v658_v22 = vpop.permute.xlu0 %657 }
 0x1e7   : > { %1445 = vmatpush.xpose.msk.msra.mxu3 %vm672_vm2, %v671_v21  ;;  %697 = vrot.lane.b32.xlu2 %v658_v22, %s1972_s16 }
 0x1ea   : > { %1446 = vmatmul.msk.f32.vlgmr.msra.gmra.mxu3 %vm672_vm2, %v2234_v18 }
 0x239   : > { %v724_v23 = vpop.permute.xlu2 %723 }
 0x23a   : > { %1449 = vmatpush.xpose.msk.msrb.mxu3 %vm672_vm2, %v724_v23 }
 0x23d   : > { %1450 = vmatmul.msk.f32.vlgmr.msrb.gmra.mxu3 %vm672_vm2, %v660_v20 }
 0x241   : > { %v698_v24 = vpop.permute.xlu2 %697 }
 0x242   : > { %1447 = vmatpush.xpose.msk.msrb.mxu0 %vm672_vm2, %v698_v24 }
 0x245   : > { %1448 = vmatmul.msk.f32.vlgmr.msrb.gmra.mxu0 %vm672_vm2, %v658_v22 }
 0x251   : > { %v750_v25 = vpop.permute.xlu0 %749 }
 0x252   : > { %1451 = vmatpush.xpose.msk.msrb.mxu1 %vm672_vm2, %v750_v25 }
 0x255   : > { %1452 = vmatmul.msk.f32.vlgmr.msrb.gmra.mxu1 %vm672_vm2, %v662_v19 }
 0x26d   : > { %v694_v26 = vpop.f32.mrf.mxu3 }
 0x26e   : > { %v775_v27 = vmul.f32 0.35355338, %v694_v26 }
 0x270   : > { %783 = vrot.lane.b32.xlu0 %v775_v27, %s1974_s25 }
 0x2c0   : > { %v746_v28 = vpop.f32.mrf.mxu3 }
 0x2c1   : > { %v777_v29 = vmul.f32 0.35355338, %v746_v28 }
 0x2c2   : > { %v720_v30 = vpop.f32.mrf.mxu0 }
 0x2c3   : > { %v776_v31 = vmul.f32 0.35355338, %v720_v30  ;;  %787 = vrot.lane.b32.xlu1 %v777_v29, %s1974_s25 }
 0x2c5   : > { %785 = vrot.lane.b32.xlu2 %v776_v31, %s1974_s25 }
 0x2d2   : > { %v772_v32 = vpop.f32.mrf.mxu1 }
 0x2d3   : > { %v778_v33 = vmul.f32 0.35355338, %v772_v32 }
 0x2d5   : > { %789 = vrot.lane.b32.xlu1 %v778_v33, %s1974_s25 }
 0x2e2   : > { %v784_v35 = vpop.permute.xlu0 %783 }
 0x2e3   : > { %v795_v36 = vsel %vm564_vm3, -1e+30, %v784_v35 }
 0x2e4   : > { %v800_v37 = vsel %vm799_vm4, %v795_v36, -inf }
 0x2ff   : > { %801 = vmax.xlane.f32.xlu1 %v800_v37 }
 0x31f   : > { %v786_v38 = vpop.permute.xlu2 %785 }
 0x320   : > { %v796_v39 = vsel %vm564_vm3, -1e+30, %v786_v38 }
 0x321   : > { %v803_v40 = vsel %vm799_vm4, %v796_v39, -inf }
 0x322   : > { %804 = vmax.xlane.f32.xlu0 %v803_v40 }
 0x335   : > { %v788_v41 = vpop.permute.xlu1 %787 }
 0x336   : > { %v797_v45 = vsel %vm564_vm3, -1e+30, %v788_v41 }
 0x337   : > { %v806_v46 = vsel %vm799_vm4, %v797_v45, -inf }
 0x347   : > { %v790_v42 = vpop.permute.xlu1 %789 }
 0x348   : > { %v798_v43 = vsel %vm564_vm3, -1e+30, %v790_v42 }
 0x349   : > { %v809_v44 = vsel %vm799_vm4, %v798_v43, -inf }
 0x34a   : > { %810 = vmax.xlane.f32.xlu2 %v809_v44  ;;  %v985_v44 = vld [vmem:[%s2395_s6 + $0x8] sm:$0xff] }
 0x352   : > { %807 = vmax.xlane.f32.xlu2 %v806_v46  ;;  %v984_v46 = vld [vmem:[%s2395_s6] sm:$0xff] }
 0x372   : > { %v802_v47 = vpop.xlane.xlu1 %801 }
 0x373   : > { %v812_v48 = vsub.f32 %v795_v36, %v802_v47 }
 0x375   : > { %v816_v49 = vmul.f32 1.442695, %v812_v48  ;;  %v1057_v48 = vld [vmem:[%s2395_s6 + $0x18] sm:$0xff] }
 0x377   : > { %1606 = vpow2.f32 %v816_v49  ;;  %v1085_v49 = vld [vmem:[#allocation13 + $0x18] sm:$0xff] }
 0x37d   : > { %v1607_v50 = vpop.eup %1606 }
 0x37e   : > { %v2271_v51 = vsel %vm564_vm3, 0.0, %v1607_v50  ;;  %v1084_v50 = vld [vmem:[#allocation13 + $0x10] sm:$0xff] }
 0x37f   : > { %832 = vrot.lane.b32.xlu1 %v2271_v51, %s1975_s26 }
 0x395   : > { %v805_v52 = vpop.xlane.xlu0 %804 }
 0x396   : > { %v813_v53 = vsub.f32 %v796_v39, %v805_v52  ;;  %v1082_v52 = vld [vmem:[#allocation13] sm:$0xff] }
 0x398   : > { %v818_v54 = vmul.f32 1.442695, %v813_v53  ;;  %v652_v53 = vpop.f32.mrf.mxu2 }
 0x39a   : > { %1608 = vpow2.f32 %v818_v54 }
 0x3a0   : > { %v1609_v55 = vpop.eup %1608 }
 0x3a1   : > { %v825_v56 = vsel %vm564_vm3, 0.0, %v1609_v55 }
 0x3a2   : > { %834 = vrot.lane.b32.xlu0 %v825_v56, %s1975_s26 }
 0x3bd   : > { %v811_v57 = vpop.xlane.xlu2 %810 }
 0x3be   : > { %v815_v58 = vsub.f32 %v798_v43, %v811_v57 }
 0x3c0   : > { %v822_v59 = vmul.f32 1.442695, %v815_v58  ;;  %v1604_v58 = vld [vmem:[#allocation14] ss:$0 sm:$0xff] }
 0x3c2   : > { %1610 = vpow2.f32 %v822_v59 }
 0x3c5   : > { %v808_v60 = vpop.xlane.xlu2 %807 }
 0x3c6   : > { %v814_v61 = vsub.f32 %v797_v45, %v808_v60  ;;  %v1032_v45 = vld [vmem:[%s2395_s6 + $0x10] sm:$0xff] }
 0x3c8   : > { %v1611_v62 = vpop.eup %1610  ;;  %v820_v63 = vmul.f32 1.442695, %v814_v61 }
 0x3c9   : > { %v827_v0 = vsel %vm564_vm3, 0.0, %v1611_v62 }
 0x3ca   : > { %1612 = vpow2.f32 %v820_v63  ;;  %838 = vrot.lane.b32.xlu0 %v827_v0, %s1975_s26 }
 0x3d0   : > { %v1613_v1 = vpop.eup %1612 }
 0x3d1   : > { %v826_v2 = vsel %vm564_vm3, 0.0, %v1613_v1 }
 0x3d2   : > { %836 = vrot.lane.b32.xlu2 %v826_v2, %s1975_s26 }
 0x3f1   : > { %v833_v3 = vpop.permute.xlu1 %832 }
 0x3f2   : > { %v844_v4 = vsel %vm672_vm2, %v833_v3, 0.0 }
 0x3f4   : > { %845 = vadd.xlane.f32.xlu0 %v844_v4 }
 0x414   : > { %v835_v5 = vpop.permute.xlu0 %834 }
 0x415   : > { %v847_v6 = vsel %vm672_vm2, %v835_v5, 0.0 }
 0x416   : > { %848 = vadd.xlane.f32.xlu1 %v847_v6 }
 0x42c   : > { %v837_v7 = vpop.permute.xlu2 %836 }
 0x42d   : > { %v850_v8 = vsel %vm672_vm2, %v837_v7, 0.0  ;;  %v1978_v7 = vmov 40  }
 0x42e   : > { %851 = vadd.xlane.f32.xlu2 %v850_v8  ;;  %1602 = vset.pattern.permute.xlu0 %v1978_v7  ;;  %v1979_v8 = vmov 0  }
 0x42f   : > { %664 = vrot.lane.b32.xlu1 %v655_v9, %s1973_s5 }
 0x43c   : > { %v839_v10 = vpop.permute.xlu0 %838 }
 0x43d   : > { %v853_v11 = vsel %vm672_vm2, %v839_v10, 0.0 }
 0x43e   : > { %854 = vadd.xlane.f32.xlu0 %v853_v11 }
 0x446   : > { %666 = vrot.lane.b32.xlu2 %v655_v9, %s1971_s13 }
 0x452   : > { %668 = vrot.lane.b32.xlu0 %v655_v9, %s1970_s17  ;;  %s562_s17 = scalar_lea.vmem [#allocation16], %s2199_s8 }
 0x453   : > { %s1266_s13 = sshll.u32 %s562_s17, 4  ;;  %s1267_s13 = int_to_ptr.vmem [resolvable:$true] %s1266_s13 }
 0x45a   : > { %875 = vrot.lane.b32.xlu0 %v655_v9, %s1976_s30  ;;  %v1181_v9 = vsel %vm564_vm3, 1, %v1979_v8  ;;  %vm1248_vm3 = vcmask 48128  }
 0x467   : > { %v846_v13 = vpop.xlane.xlu0 %845 }
 0x468   : > { %vm856_vm7 = vcmp.gt.f32.partialorder %v846_v13, 0.0 }
 0x469   : > { %v860_v19 = vsel %vm856_vm7, %v846_v13, 1.0 }
 0x489   : > { %v849_v12 = vpop.xlane.xlu1 %848 }
 0x48a   : > { %vm857_vm6 = vcmp.gt.f32.partialorder %v849_v12, 0.0 }
 0x48b   : > { %v861_v17 = vsel %vm857_vm6, %v849_v12, 1.0 }
 0x4a1   : > { %v852_v14 = vpop.xlane.xlu2 %851  ;;  %v665_v20 = vpop.permute.xlu1 %664 }
 0x4a2   : > { %vm858_vm5 = vcmp.gt.f32.partialorder %v852_v14, 0.0 }
 0x4a3   : > { %v862_v16 = vsel %vm858_vm5, %v852_v14, 1.0 }
 0x4a4   : > { %1614 = vrcp.f32 %v862_v16 }
 0x4a5   : > { %1616 = vrcp.f32 %v861_v17 }
 0x4a6   : > { %1618 = vrcp.f32 %v860_v19 }
 0x4a9   : > { %v667_v21 = vpop.permute.xlu2 %666 }
 0x4aa   : > { %v1615_v22 = vpop.eup %1614  ;;  %v1597_v23 = vpack.i.bf16 %v665_v20, %v667_v21 }
 0x4ab   : > { %v870_v24 = vmul.f32 %v1615_v22, %v826_v2  ;;  %v1617_v25 = vpop.eup %1616 }
 0x4ac   : > { %1598 = vrot.lane.b32.xlu2 %v1597_v23, %s1976_s30  ;;  %v1619_v26 = vpop.eup %1618  ;;  %v869_v28 = vmul.f32 %v1617_v25, %v825_v56 }
 0x4ad   : > { %929 = vrot.lane.b32.xlu1 %v870_v24, %s1975_s26  ;;  %v868_v30 = vmul.f32 %v1619_v26, %v2271_v51  ;;  %v1083_v51 = vld [vmem:[#allocation13 + $0x8] sm:$0xff] }
 0x4ae   : > { %v1190_v26 = vld [vmem:[%s2398_s9 + $0x18] sm:$0xff] }
 0x4b1   : > { %v855_v27 = vpop.xlane.xlu0 %854 }
 0x4b2   : > { %vm859_vm8 = vcmp.gt.f32.partialorder %v855_v27, 0.0 }
 0x4b3   : > { %v863_v29 = vsel %vm859_vm8, %v855_v27, 1.0  ;;  %v608_v27 = vperm.slane %v2231_v15, 1  ;;  %v1188_v15 = vld [vmem:[%s2398_s9 + $0x8] sm:$0xff] }
 0x4b4   : > { %1620 = vrcp.f32 %v863_v29  ;;  %901 = vrot.lane.b32.xlu2 %v869_v28, %s1975_s26 }
 0x4b5   : > { %873 = vrot.lane.b32.xlu1 %v868_v30, %s1975_s26  ;;  %v653_v28 = vadd.f32 %v652_v53, %v608_v27 }
 0x4ba   : > { %v1621_v31 = vpop.eup %1620 }
 0x4bb   : > { %v871_v32 = vmul.f32 %v1621_v31, %v827_v0 }
 0x4bd   : > { %957 = vrot.lane.b32.xlu0 %v871_v32, %s1975_s26 }
 0x4c4   : > { %v669_v33 = vpop.permute.xlu0 %668 }
 0x4c5   : > { %959 = vrot.lane.b32.xlu2 %v669_v33, %s1976_s30 }
 0x4cc   : > { %v876_v35 = vpop.permute.xlu0 %875 }
 0x4cd   : > { %895 = vmatpush.msrb.mxu2 %v876_v35 }
 0x4cf   : > { %1004 = vmatpush.msra.mxu2 %v985_v44 }
 0x506   : > { %v1599_v36 = vpop.permute.xlu2 %1598 }
 0x507   : > { %v1601_v37 = vunpack.i.h.bf16 %v1599_v36  ;;  %v1600_v38 = vunpack.i.l.bf16 %v1599_v36 }
 0x509   : > { %923 = vmatpush.msra.mxu0 %v1601_v37  ;;  %951 = vmatpush.msra.mxu3 %v1600_v38  ;;  %v1189_v38 = vld [vmem:[%s2398_s9 + $0x10] sm:$0xff] }
 0x50b   : > { %1051 = vmatpush.msrb.mxu3 %v1032_v45  ;;  %1027 = vmatpush.msrb.mxu0 %v984_v46 }
 0x50e   : > { %v902_v39 = vpop.permute.xlu2 %901 }
 0x50f   : > { %1454 = vmatmul.msk.f32.vlgmr.msra.gmra.mxu0 %vm672_vm2, %v902_v39  ;;  %v1187_v39 = vld [vmem:[%s2398_s9] sm:$0xff] }
 0x51f   : > { %v930_v40 = vpop.permute.xlu1 %929  ;;  %v960_v41 = vpop.permute.xlu2 %959 }
 0x520   : > { %1455 = vmatmul.msk.f32.vlgmr.msra.gmra.mxu3 %vm672_vm2, %v930_v40  ;;  %979 = vmatpush.msra.mxu1 %v960_v41  ;;  %v1191_v41 = vld [vmem:[%s2399_s10] sm:$0xff] }
 0x521   : > { %1231 = vmatpush.msra.mxu3 %v1190_v26  ;;  %1211 = vmatpush.msra.mxu0 %v1191_v41 }
 0x522   : > { %1076 = vmatpush.msrb.mxu1 %v1057_v48 }
 0x523   : > { %1232 = vmatpush.msra.mxu3 %v1189_v38 }
 0x525   : > { %1233 = vmatpush.msra.mxu3 %v1188_v15 }
 0x527   : > { %v874_v42 = vpop.permute.xlu1 %873  ;;  %1234 = vmatpush.msra.mxu3 %v1187_v39 }
 0x528   : > { %1453 = vmatmul.msk.f32.vlgmr.msrb.gmra.mxu2 %vm672_vm2, %v874_v42 }
 0x529   : > { %1105 = vmatpush.msrb.mxu2 %v1085_v49 }
 0x52b   : > { %1106 = vmatpush.msrb.mxu2 %v1084_v50 }
 0x52d   : > { %1107 = vmatpush.msrb.mxu2 %v1083_v51 }
 0x52f   : > { %v958_v43 = vpop.permute.xlu0 %957  ;;  %1108 = vmatpush.msrb.mxu2 %v1082_v52 }
 0x530   : > { %1456 = vmatmul.msk.f32.vlgmr.msra.gmra.mxu1 %vm672_vm2, %v958_v43 }
 0x58c   : > { %v925_v47 = vpop.f32.mrf.mxu0 }
 0x58d   : > { %1457 = vmatmul.msk.f32.vlgmr.msra.gmra.mxu2 %vm672_vm2, %v925_v47 }
 0x595   : > { %1461 = vmatmul.msk.f32.vlgmr.msrb.gmra.mxu2 %vm611_vm1, %v2258_v34 }
 0x5a3   : > { %v953_v54 = vpop.f32.mrf.mxu3 }
 0x5a4   : > { %1459 = vmatmul.msk.f32.vlgmr.msrb.gmra.mxu3 %vm672_vm2, %v953_v54 }
 0x5ab   : > { %v897_v55 = vpop.f32.mrf.mxu2 }
 0x5ac   : > { %1458 = vmatmul.msk.f32.vlgmr.msrb.gmra.mxu0 %vm672_vm2, %v897_v55 }
 0x5ad   : > { %v981_v56 = vpop.f32.mrf.mxu1 }
 0x5ae   : > { %1460 = vmatmul.msk.f32.vlgmr.msrb.gmra.mxu1 %vm672_vm2, %v981_v56 }
 0x610   : > { %v1006_v57 = vpop.f32.mrf.mxu2 }
 0x618   : > { %v1110_v59 = vpop.f32.mrf.mxu2 }
 0x619   : > { %v1111_v60 = vadd.f32 %v1604_v58, %v1110_v59 }
 0x61b   : > { %1119 = vrot.lane.b32.xlu2 %v1111_v60, %s1972_s16  ;;  %1163 = vrot.lane.b32.xlu0 %v1111_v60, %s1977_s23  ;;  %v1605_v60 = vld [vmem:[%s2430_s2] ss:$0 sm:$0xff]  ;;  %s2431_s23 = sld [smem:[#allocation34_spill]] }
 0x621   : > { %s2432_s29 = smov %s2431_s23  ;;  %s1264_s19 = scalar_lea.hbm %s2431_s23, %s1467_s15 }
 0x622   : > { %s1268_s5 = sshll.u32 %s1264_s19, 4  ;;  %s1269_s5 = int_to_ptr.hbm [resolvable:$true] %s1268_s5 }
 0x623   : > { %1183 = vperm.xlu0 %1602, %v1181_v9   ;;  %s1886_s25 = sshra.s32 %s1269_s5, 4  ;;  %s1887_s25 = int_to_ptr.hbm [resolvable:$true] %s1886_s25 }
 0x624   : > { %s1888_s26 = scalar_lea.hbm %s1887_s25, 8  ;;  %p1893_p7 = scmp.lt.s32.totalorder %s1887_s25, %s2432_s29 }
 0x625   : > { %p1889_p1 = scmp.ne.s32.totalorder %s1887_s25, %s1888_s26 }
 0x627   : > { %v1053_v63 = vpop.f32.mrf.mxu3  ;;  %p1890_p3 = pnand %p1889_p1, %p2143_p4 }
 0x629   : > { %v1029_v61 = vpop.f32.mrf.mxu0  ;;  %p1891_p12 = pneg %p1890_p3 }
 0x62a   : > { %v1030_v62 = vadd.f32 %v1029_v61, %v1006_v57 }
 0x62b   : > { %v1078_v1 = vpop.f32.mrf.mxu1 }
 0x62c   : > { %v1056_v0 = vadd.f32 %v1053_v63, %v1030_v62 }
 0x62e   : > { %v1081_v2 = vadd.f32 %v1078_v1, %v1056_v0 }
 0x630   : > { %1114 = vrot.lane.b32.xlu1 %v1081_v2, %s1972_s16 }
 0x675   : > { %v1120_v4 = vpop.permute.xlu2 %1119 }
 0x68d   : > { %v1164_v23 = vpop.permute.xlu0 %1163 }
 0x695   : > { %v1184_v53 = vpop.permute.xlu0 %1183 }
 0x6a2   : > { %v1115_v3 = vpop.permute.xlu1 %1114 }
 0x6a3   : > { %v1117_v5 = vadd.f32 %v1115_v3, %v2234_v18  ;;  %v1142_v29 = vadd.f32 %v1115_v3, %v653_v28 }
 0x6a5   : > { %v1122_v6 = vadd.f32 %v1120_v4, %v1117_v5  ;;  %v1143_v33 = vadd.f32 %v1142_v29, %v1120_v4 }
 0x6a7   : > { %v1462_v10 = vmul.f32 -1.442695, %v1122_v6  ;;  %v1463_v35 = vmul.f32 -1.442695, %v1143_v33 }
 0x6a9   : > { %1622 = vpow2.f32 %v1462_v10 }
 0x6af   : > { %v1623_v11 = vpop.eup %1622 }
 0x6b0   : > { %v1126_v12 = vadd.f32 1.0, %v1623_v11 }
 0x6b2   : > { %1624 = vrcp.f32 %v1126_v12  ;;  %v1138_v17 = vand.u32 2147483648, %v1126_v12  ;;  %v1136_v18 = vand.u32 2147483647, %v1126_v12  ;;  %vm1132_vm10 = vweird.f32 %v1126_v12 }
 0x6b4   : > { %v1139_v21 = vor.u32 1.1754944e-38, %v1138_v17  ;;  %vm1137_vm12 = vcmp.eq.f32.partialorder %v1136_v18, 8.507059e+37 }
 0x6b8   : > { %v1625_v13 = vpop.eup %1624 }
 0x6b9   : > { %v1128_v14 = vmul.f32 %v1625_v13, %v1126_v12  ;;  %vm1133_vm9 = vweird.f32 %v1625_v13 }
 0x6ba   : > { %vm1134_vm11 = vmor %vm1132_vm10, %vm1133_vm9 }
 0x6bb   : > { %v1129_v16 = vsub.f32 1.0, %v1128_v14 }
 0x6bd   : > { %v1130_v19 = vmul.f32 %v1625_v13, %v1129_v16 }
 0x6bf   : > { %v1131_v20 = vadd.f32 %v1625_v13, %v1130_v19 }
 0x6c1   : > { %v1135_v22 = vsel %vm1134_vm11, %v1625_v13, %v1131_v20 }
 0x6c2   : > { %v1140_v24 = vsel %vm1137_vm12, %v1139_v21, %v1135_v22 }
 0x6c3   : > { %v1166_v25 = vmul.f32 %v1164_v23, %v1140_v24 }
 0x6c5   : > { %1168 = vrot.lane.b32.xlu1 %v1166_v25, %s1976_s30 }
 0x6cd   : > { %1192 = vrot.lane.b32.xlu1 %v2258_v34, %s1972_s16 }
 0x737   : > { %v1169_v30 = vpop.permute.xlu1 %1168 }
 0x738   : > { %v1171_v31 = vadd.f32 %v1169_v30, %v1142_v29 }
 0x73a   : > { %1626 = vtanh.f32 %v1171_v31 }
 0x73b   : > { %1628 = vpow2.f32 %v1463_v35 }
 0x73f   : > { %v1193_v42 = vpop.permute.xlu1 %1192 }
 0x740   : > { %v1627_v32 = vpop.eup %1626  ;;  %1464 = vmatmul.msk.f32.vlgmr.msra.gmra.mxu0 %vm672_vm2, %v1193_v42  ;;  %vm1185_vm2 = vcmp.eq.s32.totalorder %v1184_v53, 1 }
 0x741   : > { %1175 = vrot.lane.b32.xlu2 %v1627_v32, %s1972_s16  ;;  %v1629_v36 = vpop.eup %1628  ;;  %s1892_s16 = scalar_lea.hbm %s2432_s29, 16 }
 0x742   : > { %v1147_v37 = vadd.f32 1.0, %v1629_v36  ;;  %p1894_p9 = scmp.lt.s32.totalorder %s1892_s16, %s1888_s26 }
 0x744   : > { %1630 = vrcp.f32 %v1147_v37  ;;  %v1159_v47 = vand.u32 2147483648, %v1147_v37  ;;  %vm1153_vm14 = vweird.f32 %v1147_v37  ;;  %v1157_v48 = vand.u32 2147483647, %v1147_v37  ;;  %p1895_p8 = por %p1894_p9, %p1893_p7 }
 0x746   : > { %v1160_v50 = vor.u32 1.1754944e-38, %v1159_v47  ;;  %vm1158_vm0 = vcmp.eq.f32.partialorder %v1157_v48, 8.507059e+37  ;;  %p1896_p10 = pnand %p1895_p8, %p1891_p12 }
 0x74a   : > { %v1631_v40 = vpop.eup %1630 }
 0x74b   : > { %v1149_v43 = vmul.f32 %v1631_v40, %v1147_v37  ;;  %vm1154_vm13 = vweird.f32 %v1631_v40 }
 0x74c   : > { %vm1155_vm15 = vmor %vm1153_vm14, %vm1154_vm13 }
 0x74d   : > { %v1150_v44 = vsub.f32 1.0, %v1149_v43 }
 0x74f   : > { %v1151_v45 = vmul.f32 %v1631_v40, %v1150_v44 }
 0x751   : > { %v1152_v46 = vadd.f32 %v1631_v40, %v1151_v45 }
 0x753   : > { %v1156_v49 = vsel %vm1155_vm15, %v1631_v40, %v1152_v46 }
 0x754   : > { %v1161_v51 = vsel %vm1158_vm0, %v1160_v50, %v1156_v49 }
 0x755   : > { %v1173_v52 = vsub.f32 1.0, %v1161_v51  ;;  %v1179_v55 = vmul.f32 %v1161_v51, %v2258_v34 }
 0x79b   : > { %v1176_v54 = vpop.permute.xlu2 %1175 }
 0x79c   : > { %v1178_v56 = vmul.f32 %v1176_v54, %v1173_v52 }
 0x79e   : > { %v1180_v57 = vadd.f32 %v1179_v55, %v1178_v56 }
 0x7a0   : > { %v1186_v58 = vsel %vm1185_vm2, 0.0, %v1180_v57 }
 0x7a1   : > { %1245 = vrot.lane.b32.xlu2 %v1186_v58, %s1980_s14  ;;  %1465 = vmatmul.msk.f32.vlgmr.msra.gmra.mxu3 %vm611_vm1, %v1186_v58  ;;  %vm1250_vm1 = vcmask 310272  }
 0x7bd   : > { %v1213_v59 = vpop.f32.mrf.mxu0 }
 0x7fb   : > { %v1246_v63 = vpop.permute.xlu2 %1245 }
 0x824   : > { %v1236_v61 = vpop.f32.mrf.mxu3 }
 0x825   : > { %v1237_v34 = vadd.f32 %v1236_v61, %v1213_v59 }
 0x827   : > { %v1243_v62 = vadd.f32 %v1605_v60, %v1237_v34 }
 0x829   : > { %v1244_v0 = vsel %vm1185_vm2, 0.0, %v1243_v62 }
 0x82a   : > { %v1249_v1 = vsel %vm1248_vm3, %v1244_v0, %v1246_v63 }
 0x82b   : > { %v1251_v2 = vsel %vm1250_vm1, %v1249_v1, 0.0 }
 0x82c   : > { %1252 = vst [vmem:[%s562_s17] sm:$0xff] %v1251_v2 }
 0x82d   : > { %1899 = shalt.err (!%p1896_p10)
}
 0x82e   : > { %1498 = dma.vmem_to_hbm [thread:$0]  (%p2143_p4), %s1267_s13, 128, %s1269_s5, %s1254_s28  }
 0x82f PF: > { %s1280_s7 = sand.u32 1, %s1946_s21   ;;  %p2433_p11 = scmp.ge.s32.totalorder %s1958_s24, 2 }
 0x830   : > { %s1281_s15 = scalar_lea.sflag [#allocation4], %s1280_s7 }
 0x831   : > { %p1527_p5 = pnand %p2433_p11, %p2147_p6 }
 0x833   : > { %p1528_p13 = pneg %p1527_p5 }
 0x835   : > { %1941 = dma.done.wait (%p1528_p13), %s1281_s15, 128  }
 0x836   : > { %1943 = vsyncadd (%p1528_p13), %s1281_s15, 4294967168  ;;  %s2434_s24 = sld [smem:[#allocation25_spill]]  ;;  %s2437_s21 = smov %s1950_s22 }
 0x837   : > { %s2435_s18 = sld [smem:[#allocation24_spill]] }
 0x838   : > { %s2436_s23 = sld [smem:[#allocation26_spill]] }
 0x83c   : > { %p31_p0 = scmp.ge.s32.totalorder %s2434_s24, 4  }
 0x83d   : > { %s2438_s22 = smov %s2435_s18 }
 0x83e   :  { %33 = sbr.rel (!%p31_p0) target bundleno = 19 (0x13), region = 150 }
 0x843   :  { %1287 = vsyncpa [#allocation3], 1 }
 0x844   :  { %1289 = vsyncpa [#allocation3 + $0x1], 1 }
 0x845   :  { %1290 = vsyncpa [#allocation6], 1 }
 0x846   :  { %1292 = vsyncpa [#allocation6 + $0x1], 1 }
 0x847   :  { %1293 = vsyncpa [#allocation9], 1 }
 0x848   :  { %1294 = vsyncpa [#allocation12], 1 }
 0x849   :  { %1295 = vsyncpa [#allocation15], 1 }
 0x84a   :  { %1296 = vsyncpa [#allocation4], 1 }
 0x84b   :  { %1298 = vsyncpa [#allocation4 + $0x1], 1 }

</bundles_post_ra>
